<compile_context>
chip_gen: v7x
topology: tpu7x:2x2x1
jax: 0.10.0
libtpu: 0.0.40
codegen_flags: <defaults>
</compile_context>

<pallas_src>
import numpy as np
import jax
import jax.numpy as jnp
from jax.experimental import pallas as pl
from jax.experimental.pallas import tpu as pltpu


_LANE = 128
_SUBLANE = 8
_MAX_COL_BLOCK = 4096      # cap on the lane-dim block (elements)
_MIN_TOTAL_STEPS = 8       # keep the pipeline deep enough to overlap DMA/compute


def _build_position_enc(d_model: int, seq_len: int) -> jnp.ndarray:
    """Deterministic sinusoidal table, identical math to the PyTorch __init__."""
    position_enc = np.array(
        [
            [pos / np.power(10000, 2 * (j // 2) / d_model) for j in range(d_model)]
            for pos in range(seq_len)
        ]
    )
    position_enc[:, 0::2] = np.sin(position_enc[:, 0::2])
    position_enc[:, 1::2] = np.cos(position_enc[:, 1::2])
    # unsqueeze(0) + .float() -> shape (1, seq_len, d_model), float32
    return jnp.asarray(position_enc[None, :, :], dtype=jnp.float32)


def _pe_mul_kernel(x_ref, pe_ref, o_ref):
    # (TB, TC) * (1, TC): sublane-broadcast multiply.  Pure VPU work on
    # lane-dense vregs; the binding resource is HBM DMA on every generation,
    # so the body stays a single multiply.
    o_ref[...] = x_ref[...] * pe_ref[...]


def _generation_budget():
    """(per-buffer target block bytes, vmem_limit_bytes), generation-aware."""
    target_block_bytes = 2 * 1024 * 1024     # v5e / v6e sweet spot
    vmem_limit = 32 * 1024 * 1024
    try:
        info = pltpu.get_tpu_info()
        vmem_cap = getattr(info, "vmem_capacity_bytes", None)
        if vmem_cap is not None and vmem_cap <= 64 * 1024 * 1024:
            # 64 MiB per-core VMEM identifies the v7x class: HBM is ~2.3x
            # faster, so larger tiles are needed to amortize per-step overhead.
            # 4 x 8 MiB double-buffered working set still fits with headroom.
            target_block_bytes = 8 * 1024 * 1024
            vmem_limit = 48 * 1024 * 1024
    except Exception:
        pass  # unknown / emulated target: keep the conservative defaults
    return target_block_bytes, vmem_limit


def _pick_col_block(cols: int) -> int:
    """Lane-dim block: full extent if it fits, else balanced 128-multiples."""
    if cols <= _MAX_COL_BLOCK:
        return cols  # full array extent is always a legal block dim
    n_blocks = pl.cdiv(cols, _MAX_COL_BLOCK)
    tc = pl.cdiv(cols, n_blocks)               # balanced split avoids a
    tc = ((tc + _LANE - 1) // _LANE) * _LANE   # near-empty trailing block
    return tc                                   # always <= _MAX_COL_BLOCK


def _pick_row_block(rows, col_block, itemsize, target_block_bytes, n_col_blocks):
    """Sublane (row) block: sized to the VMEM budget but small enough that the
    grid has ~_MIN_TOTAL_STEPS steps (pipeline overlap + dual-TC occupancy)."""
    if rows <= _SUBLANE:
        return rows  # full extent (legal); too few rows to split further
    target_rows = max(_SUBLANE, target_block_bytes // (col_block * itemsize))
    min_row_blocks = max(1, pl.cdiv(_MIN_TOTAL_STEPS, n_col_blocks))
    depth_cap = pl.cdiv(rows, min_row_blocks)
    tb = min(rows, target_rows, depth_cap)
    tb = max(_SUBLANE, (tb // _SUBLANE) * _SUBLANE)
    # Best-effort: keep the row-block count even so v7x's two TensorCores see
    # a balanced "parallel" axis (no-op on single-TC v5e/v6e).
    n_row_blocks = pl.cdiv(rows, tb)
    if n_row_blocks > 1 and n_row_blocks % 2 == 1:
        cand = pl.cdiv(rows, n_row_blocks + 1)
        cand = max(_SUBLANE, ((cand + _SUBLANE - 1) // _SUBLANE) * _SUBLANE)
        if pl.cdiv(rows, cand) % 2 == 0:
            tb = cand
    return tb


def position_encoder_forward(x: jnp.ndarray, position_enc: jnp.ndarray,
                             *, donate_x: bool = False) -> jnp.ndarray:
    """x: (B, S, D), position_enc: (1, S, D) -> (B, S, D) (= x * PE)."""
    B, S, D = x.shape
    assert position_enc.shape == (1, S, D)
    assert x.dtype == position_enc.dtype

    cols = S * D
    # Tiny feature extent: a Pallas launch would pay fixed overhead plus
    # lane-masked partial stores; plain XLA is strictly better here.
    if cols < _LANE:
        return x * position_enc

    # Free contiguous folds: the broadcast axis (B) stays the row axis; S and
    # D fold together (never mixed across the broadcast boundary).
    x2 = x.reshape(B, cols)
    pe2 = position_enc.reshape(1, cols)

    target_block_bytes, vmem_limit = _generation_budget()
    tc = _pick_col_block(cols)
    n_col_blocks = pl.cdiv(cols, tc)
    tb = _pick_row_block(B, tc, x.dtype.itemsize, target_block_bytes, n_col_blocks)
    n_row_blocks = pl.cdiv(B, tb)

    # Column axis outermost: the small PE tile is re-fetched only when the
    # column block changes and is reused across all row blocks in between.
    grid = (n_col_blocks, n_row_blocks)

    out2 = pl.pallas_call(
        _pe_mul_kernel,
        out_shape=jax.ShapeDtypeStruct((B, cols), x.dtype),
        grid_spec=pltpu.PrefetchScalarGridSpec(
            num_scalar_prefetch=0,
            grid=grid,
            in_specs=[
                pl.BlockSpec((tb, tc), lambda c, r: (r, c)),  # x tile
                pl.BlockSpec((1, tc), lambda c, r: (0, c)),   # shared PE tile
            ],
            out_specs=pl.BlockSpec((tb, tc), lambda c, r: (r, c)),
        ),
        compiler_params=pltpu.CompilerParams(
            # Both axes independent: shard across v7x's two TensorCores
            # (no-op on single-TC v5e/v6e).
            dimension_semantics=("parallel", "parallel"),
            vmem_limit_bytes=vmem_limit,
        ),
        # Optional: reuse x's HBM buffer for the output.  Bytes moved are the
        # same, but no separate output allocation when the caller donates x.
        input_output_aliases=({0: 0} if donate_x else {}),
    )(x2, pe2)

    return out2.reshape(B, S, D)


if __name__ == "__main__":
    # Shapes consistent with the module: batch=2, seq_len=8, d_model=32.
    B, S, D = 2, 8, 32
    key = jax.random.PRNGKey(0)
    x_a = jax.random.normal(key, (B, S, D), dtype=jnp.float32)
    pe_a = _build_position_enc(d_model=D, seq_len=S)
    out_a = jax.block_until_ready(position_encoder_forward(x_a, pe_a))
    np.testing.assert_allclose(np.asarray(out_a), np.asarray(x_a * pe_a),
                               rtol=1e-6, atol=1e-6)

    # Multi-block path: cols=4224 > 4096 -> balanced 128-multiple column
    # blocks (ragged trailing block) and several row blocks (pipeline depth).
    B2, S2, D2 = 64, 6, 704
    x_b = jax.random.normal(jax.random.PRNGKey(1), (B2, S2, D2), dtype=jnp.float32)
    pe_b = _build_position_enc(d_model=D2, seq_len=S2)
    out_b = jax.block_until_ready(position_encoder_forward(x_b, pe_b))
    np.testing.assert_allclose(np.asarray(out_b), np.asarray(x_b * pe_b),
                               rtol=1e-6, atol=1e-6)

    # Odd cols > 4096 (5000): lane-ragged trailing column block, previously
    # the robustness gap (full-extent fallback); now a balanced 2560-wide tc.
    B3, S3, D3 = 20, 5, 1000
    x_c = jax.random.normal(jax.random.PRNGKey(2), (B3, S3, D3), dtype=jnp.float32)
    pe_c = _build_position_enc(d_model=D3, seq_len=S3)
    out_c = jax.block_until_ready(position_encoder_forward(x_c, pe_c))
    np.testing.assert_allclose(np.asarray(out_c), np.asarray(x_c * pe_c),
                               rtol=1e-6, atol=1e-6)

    # Tiny feature extent (< 128 lanes): exercises the plain-XLA fallback.
    B4, S4, D4 = 3, 2, 16
    x_d = jax.random.normal(jax.random.PRNGKey(3), (B4, S4, D4), dtype=jnp.float32)
    pe_d = _build_position_enc(d_model=D4, seq_len=S4)
    out_d = jax.block_until_ready(position_encoder_forward(x_d, pe_d))
    np.testing.assert_allclose(np.asarray(out_d), np.asarray(x_d * pe_d),
                               rtol=1e-6, atol=1e-6)

    print("KERNEL_OK")
</pallas_src>

<mosaic_0001>
module attributes {stable_mosaic.version = 11 : i64} {
  func.func @_pe_mul_kernel(%arg0: i32, %arg1: i32, %arg2: memref<2x256xf32, #tpu.memory_space<vmem>>, %arg3: memref<1x256xf32, #tpu.memory_space<vmem>>, %arg4: memref<2x256xf32, #tpu.memory_space<vmem>>) attributes {dimension_semantics = [#tpu.dimension_semantics<parallel>, #tpu.dimension_semantics<parallel>], iteration_bounds = array<i64: 1, 1>, scalar_prefetch = 0 : i64, scratch_operands = 0 : i64, tpu.core_type = #tpu.core_type<tc>, window_params = [{transform_indices = @transform_0, window_bounds = array<i64: 2, 256>}, {transform_indices = @transform_1, window_bounds = array<i64: 1, 256>}, {transform_indices = @transform_2, window_bounds = array<i64: 2, 256>}]} {
    %c0 = arith.constant 0 : index
    %c0_0 = arith.constant 0 : index
    %0 = vector.load %arg2[%c0, %c0_0] : memref<2x256xf32, #tpu.memory_space<vmem>>, vector<2x256xf32>
    %c0_1 = arith.constant 0 : index
    %c0_2 = arith.constant 0 : index
    %1 = vector.load %arg3[%c0_1, %c0_2] : memref<1x256xf32, #tpu.memory_space<vmem>>, vector<1x256xf32>
    %2 = vector.broadcast %1 : vector<1x256xf32> to vector<2x256xf32>
    %3 = arith.mulf %0, %2 : vector<2x256xf32>
    %c0_3 = arith.constant 0 : index
    %c0_4 = arith.constant 0 : index
    %4 = vector.load %arg4[%c0_3, %c0_4] : memref<2x256xf32, #tpu.memory_space<vmem>>, vector<2x256xf32>
    tpu.vector_store %arg4[%c0_3, %c0_4], %3 {strides = array<i32>} : memref<2x256xf32, #tpu.memory_space<vmem>>, vector<2x256xf32>,
    return
  }
  func.func @transform_0(%arg0: i32, %arg1: i32) -> (i32, i32) {
    %c0_i32 = arith.constant 0 : i32
    return %arg1, %arg0 : i32, i32
  }
  func.func @transform_1(%arg0: i32, %arg1: i32) -> (i32, i32) {
    %c0_i32 = arith.constant 0 : i32
    %c0_i32_0 = arith.constant 0 : i32
    return %c0_i32, %arg0 : i32, i32
  }
  func.func @transform_2(%arg0: i32, %arg1: i32) -> (i32, i32) {
    %c0_i32 = arith.constant 0 : i32
    return %arg1, %arg0 : i32, i32
  }
}

</mosaic_0001>

<bundles_post_ra>
// kernel: tpu_custom_call.1
= control target key start
LH: loop header
LB: loop body
LE: loop exit
PB: predicated region body
PF: predicated region fallthrough
CT: control target
= control target key end

     0   :  { %7 = vsyncpa [#allocation3], 0  ;;  %s157_s0 = inlined_call_operand.hbm [shape: f32[2,256], index: 0, kind: input, shape index: {}]   ;;  %s158_s1 = inlined_call_operand.vmem [shape: f32[1,256], index: 1, kind: input, shape index: {}]   ;;  %s159_s2 = inlined_call_operand.hbm [shape: f32[2,256], index: 2, kind: output, shape index: {}]  }
   0x1   :  { %8 = vsyncpa [#allocation4], 0  ;;  %s112_s9 = smov [#allocation2]   ;;  %s64_s13 = scalar_lea.hbm %s157_s0, 64 }
   0x2   :  { %s15_s10 = sshll.u32 %s112_s9, 4  ;;  %p65_p0 = scmp.ne.s32.totalorder %s157_s0, %s64_s13  ;;  %s16_s10 = int_to_ptr.vmem [resolvable:$true] %s15_s10 }
   0x3   :  { %p68_p1 = scmp.lt.u32.totalorder %s64_s13, %s157_s0 }
   0x5   :  { %p70_p2 = pnand %p68_p1, %p65_p0 }
   0x7   :  { %73 = shalt.err (!%p70_p2)
}
   0x8   :  { %s74_s18 = scalar_lea.vmem %s16_s10, 64  ;;  %p79_p4 = scmp.lt.s32.totalorder %s16_s10, %s16_s10 }
   0x9   :  { %p75_p3 = scmp.ne.s32.totalorder %s16_s10, %s74_s18  ;;  %p80_p5 = scmp.lt.s32.totalorder %s74_s18, %s74_s18 }
   0xb   :  { %p81_p6 = por %p80_p5, %p79_p4 }
   0xd   :  { %p82_p7 = pnand %p81_p6, %p75_p3 }
   0xf   :  { %85 = shalt.err (!%p82_p7)
}
  0x10   :  { %18 = dma.hbm_to_vmem [thread:$0]  %s157_s0, 64, %s16_s10, [#allocation3]  }
  0x11   :  { %108 = dma.done.wait [#allocation3], 64  }
  0x12   :  { %109 = vsyncadd [#allocation3], 4294967232  ;;  %v27_v0 = vlaneseq  ;;  %v113_v1 = vmov 1983009808   ;;  %v25_v7 = vld [vmem:[%s158_s1] sm:$0x3] }
  0x13   :  { %v37_v2 = vunpack.c.l.s4 %v113_v1  ;;  %v24_v12 = vld [vmem:[#allocation2] sm:$0xf]  ;;  %s114_s23 = smov [#allocation5]  }
  0x14   :  { %v28_v3 = vshrl.u32 %v27_v0, 7  ;;  %s52_s0 = sshll.u32 %s114_s23, 4  ;;  %s53_s0 = int_to_ptr.vmem [resolvable:$true] %s52_s0 }
  0x15   :  { %v38_v6 = vunpack.c.0.s8 %v37_v2  ;;  %s86_s24 = scalar_lea.vmem %s53_s0, 64  ;;  %p91_p9 = scmp.lt.s32.totalorder %s53_s0, %s53_s0 }
  0x16   :  { %v29_v4 = vsub.s32 0, %v28_v3  ;;  %v33_v5 = vsub.s32 1, %v28_v3  ;;  %p87_p8 = scmp.ne.s32.totalorder %s53_s0, %s86_s24  ;;  %p92_p10 = scmp.lt.s32.totalorder %s86_s24, %s86_s24 }
  0x17   :  { %v41_v10 = vsub.s32 %v38_v6, %v28_v3 }
  0x18   :  { %v30_v8 = vrot.slane %v25_v7, %v29_v4  ;;  %v34_v9 = vrot.slane %v25_v7, %v33_v5  ;;  %p93_p11 = por %p92_p10, %p91_p9 }
  0x1a   :  { %v35_v11 = vcombine.low %v30_v8, %v34_v9  ;;  %p94_p12 = pnand %p93_p11, %p87_p8 }
  0x1c   :  { %v42_v13 = vrot.slane %v35_v11, %v41_v10 }
  0x1e   :  { %v44_v14 = vmul.f32 %v42_v13, %v24_v12 }
  0x20   :  { %45 = vst [vmem:[#allocation5] sm:$0xf] %v44_v14 }
  0x21   :  { %97 = shalt.err (!%p94_p12)
}
  0x22   :  { %s98_s26 = scalar_lea.hbm %s159_s2, 64 }
  0x23   :  { %p99_p13 = scmp.ne.s32.totalorder %s159_s2, %s98_s26  ;;  %p102_p0 = scmp.lt.u32.totalorder %s98_s26, %s159_s2 }
  0x25   :  { %p104_p1 = pnand %p102_p0, %p99_p13 }
  0x27   :  { %107 = shalt.err (!%p104_p1)
}
  0x28   :  { %55 = dma.vmem_to_hbm [thread:$0]  %s53_s0, 64, %s159_s2, [#allocation4]  }
  0x29   :  { %110 = dma.done.wait [#allocation4], 64  }
  0x2a   :  { %111 = vsyncadd [#allocation4], 4294967232 }
  0x2b   :  { %59 = vsyncpa [#allocation3], 1 }
  0x2c   :  { %60 = vsyncpa [#allocation4], 1 }

</bundles_post_ra>
